<compile_context>
chip_gen: v7x
topology: tpu7x:2x2x1
jax: 0.10.0
libtpu: 0.0.40
codegen_flags: <defaults>
</compile_context>

<pallas_src>
import functools

import jax
import jax.numpy as jnp
from jax.experimental import pallas as pl
from jax.experimental.pallas import tpu as pltpu

_LANES = 128
_VMEM_LIMIT = 32 * 1024 * 1024
_MAX_TILE_ROWS = 8192


def _pick_target_vals(pred, ftgt, g):
    """select(g-hot(flat targets), pred, 0) for a lane-folded block.

    pred: (T, g*C) float block (g original rows folded into the lane axis)
    ftgt: (T, g)   int32 flat in-row target positions (j*C + target[row]),
                   or -1 for padded/overhang rows (never matches).
    """
    lane = jax.lax.broadcasted_iota(jnp.int32, pred.shape, dimension=1)
    hot = lane == ftgt[:, 0:1]
    for j in range(1, g):
        hot = jnp.logical_or(hot, lane == ftgt[:, j:j + 1])
    return jnp.where(hot, pred.astype(jnp.float32), jnp.float32(0.0))


def _nll_single_kernel(pred_ref, ftgt_ref, out_ref, *, g, n_total):
    # Whole problem in one grid step: no scratch, no pl.when branches.
    picked = _pick_target_vals(pred_ref[...], ftgt_ref[...], g)
    s = jnp.sum(picked, axis=0, keepdims=True)     # sublane-direction adds
    s = jnp.sum(s, axis=1, keepdims=True)          # one lane reduction, once
    out_ref[...] = s * jnp.float32(-1.0 / n_total)


def _nll_tiled_kernel(pred_ref, ftgt_ref, out_ref, acc_ref, *,
                      g, tiles_per_core, num_real_tiles):
    i = pl.program_id(0)    # TC-parallel split (uses both cores on v7x)
    j = pl.program_id(1)    # sequential reduction over row tiles

    @pl.when(j == 0)
    def _init():
        acc_ref[...] = jnp.zeros_like(acc_ref)

    # Skip phantom steps (odd tile counts split over the 2-way parallel axis).
    @pl.when(i * tiles_per_core + j < num_real_tiles)
    def _accumulate():
        # Plain vreg adds only; no per-step cross-lane reduction.
        acc_ref[...] += _pick_target_vals(pred_ref[...], ftgt_ref[...], g)

    @pl.when(j == pl.num_programs(1) - 1)
    def _finalize():
        # Collapse the row-tile axis once; the tiny lane collapse plus the
        # cross-core combine and -1/N happen in the wrapper.
        s = jnp.sum(acc_ref[...], axis=0, keepdims=True)      # (1, g*C)
        out_ref[...] = jnp.expand_dims(s, 0)                   # (1, 1, g*C)


def nll_loss_pallas(pred, target, *, tile_rows=2048):
    """F.nll_loss(pred, target) with mean reduction.

    pred:   (N, C) float32 / bfloat16 log-probabilities
    target: (N,)   integer class indices (assumed in range)
    Returns a float32 scalar.
    """
    n, c = pred.shape

    # Lane-folding factor: pack g rows into the 128-lane axis (free reshape).
    g_cap = max(1, _LANES // c) if c < _LANES else 1
    g = 1
    for d in range(min(g_cap, n), 0, -1):
        if n % d == 0:
            g = d
            break
    r, gc = n // g, g * c

    pred_folded = pred.reshape(r, gc)                          # bitcast view
    flat_tgt = (target.astype(jnp.int32)
                + (jnp.arange(n, dtype=jnp.int32) % g) * c).reshape(r, g)

    # Tile rows (folded): multiple of 32 (covers f32/bf16 sublane packing),
    # capped so 2x double-buffered blocks + accumulator fit scoped VMEM.
    tn = int(tile_rows)
    tn = max(32, min(_MAX_TILE_ROWS, (tn // 32) * 32))

    cost = pl.CostEstimate(
        flops=2 * n * c, transcendentals=0,
        bytes_accessed=n * c * pred.dtype.itemsize + n * 4 + 8)

    if r <= tn:
        # ---- single-step fast path (the module's real shapes) ----
        out = pl.pallas_call(
            functools.partial(_nll_single_kernel, g=g, n_total=n),
            out_shape=jax.ShapeDtypeStruct((1, 1), jnp.float32),
            grid_spec=pltpu.PrefetchScalarGridSpec(
                num_scalar_prefetch=0,
                grid=(1,),
                in_specs=[pl.BlockSpec((r, gc), lambda i: (0, 0)),
                          pl.BlockSpec((r, g), lambda i: (0, 0))],
                out_specs=pl.BlockSpec((1, 1), lambda i: (0, 0)),
            ),
            compiler_params=pltpu.CompilerParams(
                dimension_semantics=("arbitrary",),
                vmem_limit_bytes=_VMEM_LIMIT,
            ),
            cost_estimate=cost,
        )(pred_folded, flat_tgt)
        return out[0, 0]

    # ---- tiled path: 2-way parallel split x sequential row tiles ----
    num_tiles = pl.cdiv(r, tn)
    n_splits = 2              # both TensorCores on v7x; harmless on 1-TC chips
    tiles_per_core = pl.cdiv(num_tiles, n_splits)
    last_block = num_tiles - 1

    # Pad the (tiny) flat-target array so overhang rows of the last real tile
    # carry -1 and never select garbage pred values.
    pad_rows = num_tiles * tn - r
    if pad_rows:
        flat_tgt = jnp.concatenate(
            [flat_tgt, jnp.full((pad_rows, g), -1, dtype=jnp.int32)], axis=0)

    def _in_map(i, j):
        # Clamp phantom steps of the split grid onto the last real block
        # (their contribution is skipped in-kernel, and the repeated block
        # index lets the pipeline skip the redundant DMA).
        return (jnp.minimum(i * tiles_per_core + j, last_block), 0)

    partials = pl.pallas_call(
        functools.partial(_nll_tiled_kernel, g=g,
                          tiles_per_core=tiles_per_core,
                          num_real_tiles=num_tiles),
        out_shape=jax.ShapeDtypeStruct((n_splits, 1, gc), jnp.float32),
        grid_spec=pltpu.PrefetchScalarGridSpec(
            num_scalar_prefetch=0,
            grid=(n_splits, tiles_per_core),
            in_specs=[pl.BlockSpec((tn, gc), _in_map),
                      pl.BlockSpec((tn, g), _in_map)],
            out_specs=pl.BlockSpec((1, 1, gc), lambda i, j: (i, 0, 0)),
            scratch_shapes=[pltpu.VMEM((tn, gc), jnp.float32)],
        ),
        compiler_params=pltpu.CompilerParams(
            dimension_semantics=("parallel", "arbitrary"),
            vmem_limit_bytes=_VMEM_LIMIT,
        ),
        cost_estimate=cost,
    )(pred_folded, flat_tgt)

    # Combine the per-core lane partials and apply -1/N (tiny XLA reduce).
    return -jnp.sum(partials) / jnp.float32(n)


def get_loss_forward(pred, target, trans_feat=None):
    # trans_feat is unused in the reference module's forward.
    return nll_loss_pallas(pred, target)


if __name__ == "__main__":
    key = jax.random.PRNGKey(0)
    k1, k2, k3, k4, k5 = jax.random.split(key, 5)

    # Module-scale shapes: batch=8, num_classes=16 (single-step fast path,
    # classes lane-folded 8x -> one (1, 128) block).
    N, C = 8, 16
    logits = jax.random.normal(k1, (N, C), dtype=jnp.float32)
    pred = jax.nn.log_softmax(logits, axis=-1)                  # log-probs
    target = jax.random.randint(k2, (N,), 0, C, dtype=jnp.int32)
    trans_feat = jax.random.normal(k3, (N, 3, 3), dtype=jnp.float32)  # unused

    loss = jax.block_until_ready(get_loss_forward(pred, target, trans_feat))
    ref = -jnp.mean(pred[jnp.arange(N), target])
    assert jnp.allclose(loss, ref, atol=1e-5, rtol=1e-5), (loss, ref)

    # Tiled path: partial last tile + phantom step (3 tiles split over 2 cores).
    N2, C2 = 600, 40
    logits2 = jax.random.normal(k4, (N2, C2), dtype=jnp.float32)
    pred2 = jax.nn.log_softmax(logits2, axis=-1)
    target2 = jax.random.randint(k5, (N2,), 0, C2, dtype=jnp.int32)
    loss2 = jax.block_until_ready(nll_loss_pallas(pred2, target2, tile_rows=96))
    ref2 = -jnp.mean(pred2[jnp.arange(N2), target2])
    assert jnp.allclose(loss2, ref2, atol=1e-5, rtol=1e-5), (loss2, ref2)

    # bf16 log-probs stay bf16 end-to-end (half the HBM bytes).
    pred2_bf16 = pred2.astype(jnp.bfloat16)
    loss3 = jax.block_until_ready(nll_loss_pallas(pred2_bf16, target2,
                                                  tile_rows=96))
    ref3 = -jnp.mean(pred2_bf16.astype(jnp.float32)[jnp.arange(N2), target2])
    assert jnp.allclose(loss3, ref3, atol=5e-3, rtol=5e-3), (loss3, ref3)

    # No-fold fallback (C >= 128 lanes -> g = 1).
    N4, C4 = 64, 200
    k6, k7 = jax.random.split(k5)
    pred4 = jax.nn.log_softmax(
        jax.random.normal(k6, (N4, C4), dtype=jnp.float32), axis=-1)
    target4 = jax.random.randint(k7, (N4,), 0, C4, dtype=jnp.int32)
    loss4 = jax.block_until_ready(nll_loss_pallas(pred4, target4))
    ref4 = -jnp.mean(pred4[jnp.arange(N4), target4])
    assert jnp.allclose(loss4, ref4, atol=1e-5, rtol=1e-5), (loss4, ref4)

    print("KERNEL_OK")
</pallas_src>

<mosaic_0001>
module attributes {stable_mosaic.version = 11 : i64} {
  func.func @_nll_single_kernel(%arg0: i32, %arg1: memref<1x128xf32, #tpu.memory_space<vmem>>, %arg2: memref<1x8xi32, #tpu.memory_space<vmem>>, %arg3: memref<1x1xf32, #tpu.memory_space<vmem>>) attributes {dimension_semantics = [#tpu.dimension_semantics<arbitrary>], iteration_bounds = array<i64: 1>, scalar_prefetch = 0 : i64, scratch_operands = 0 : i64, tpu.core_type = #tpu.core_type<tc>, window_params = [{pipeline_mode = #tpu.pipeline_mode<synchronous>, transform_indices = @transform_0, window_bounds = array<i64: 1, 128>}, {pipeline_mode = #tpu.pipeline_mode<synchronous>, transform_indices = @transform_1, window_bounds = array<i64: 1, 8>}, {pipeline_mode = #tpu.pipeline_mode<synchronous>, transform_indices = @transform_2, window_bounds = array<i64: 1, 1>}]} {
    %c0 = arith.constant 0 : index
    %c0_0 = arith.constant 0 : index
    %0 = vector.load %arg1[%c0, %c0_0] : memref<1x128xf32, #tpu.memory_space<vmem>>, vector<1x128xf32>
    %c0_1 = arith.constant 0 : index
    %c0_2 = arith.constant 0 : index
    %1 = vector.load %arg2[%c0_1, %c0_2] : memref<1x8xi32, #tpu.memory_space<vmem>>, vector<1x8xi32>
    %2 = tpu.iota {dimensions = array<i32: 1>} : vector<1x128xi32>
    %3 = vector.extract_strided_slice %1 {offsets = [0, 0], sizes = [1, 1], strides = [1, 1]} : vector<1x8xi32> to vector<1x1xi32>
    %4 = vector.broadcast %3 : vector<1x1xi32> to vector<1x128xi32>
    %5 = arith.cmpi eq, %2, %4 : vector<1x128xi32>
    %6 = vector.extract_strided_slice %1 {offsets = [0, 1], sizes = [1, 1], strides = [1, 1]} : vector<1x8xi32> to vector<1x1xi32>
    %7 = vector.broadcast %6 : vector<1x1xi32> to vector<1x128xi32>
    %8 = arith.cmpi eq, %2, %7 : vector<1x128xi32>
    %9 = arith.ori %5, %8 : vector<1x128xi1>
    %10 = vector.extract_strided_slice %1 {offsets = [0, 2], sizes = [1, 1], strides = [1, 1]} : vector<1x8xi32> to vector<1x1xi32>
    %11 = vector.broadcast %10 : vector<1x1xi32> to vector<1x128xi32>
    %12 = arith.cmpi eq, %2, %11 : vector<1x128xi32>
    %13 = arith.ori %9, %12 : vector<1x128xi1>
    %14 = vector.extract_strided_slice %1 {offsets = [0, 3], sizes = [1, 1], strides = [1, 1]} : vector<1x8xi32> to vector<1x1xi32>
    %15 = vector.broadcast %14 : vector<1x1xi32> to vector<1x128xi32>
    %16 = arith.cmpi eq, %2, %15 : vector<1x128xi32>
    %17 = arith.ori %13, %16 : vector<1x128xi1>
    %18 = vector.extract_strided_slice %1 {offsets = [0, 4], sizes = [1, 1], strides = [1, 1]} : vector<1x8xi32> to vector<1x1xi32>
    %19 = vector.broadcast %18 : vector<1x1xi32> to vector<1x128xi32>
    %20 = arith.cmpi eq, %2, %19 : vector<1x128xi32>
    %21 = arith.ori %17, %20 : vector<1x128xi1>
    %22 = vector.extract_strided_slice %1 {offsets = [0, 5], sizes = [1, 1], strides = [1, 1]} : vector<1x8xi32> to vector<1x1xi32>
    %23 = vector.broadcast %22 : vector<1x1xi32> to vector<1x128xi32>
    %24 = arith.cmpi eq, %2, %23 : vector<1x128xi32>
    %25 = arith.ori %21, %24 : vector<1x128xi1>
    %26 = vector.extract_strided_slice %1 {offsets = [0, 6], sizes = [1, 1], strides = [1, 1]} : vector<1x8xi32> to vector<1x1xi32>
    %27 = vector.broadcast %26 : vector<1x1xi32> to vector<1x128xi32>
    %28 = arith.cmpi eq, %2, %27 : vector<1x128xi32>
    %29 = arith.ori %25, %28 : vector<1x128xi1>
    %30 = vector.extract_strided_slice %1 {offsets = [0, 7], sizes = [1, 1], strides = [1, 1]} : vector<1x8xi32> to vector<1x1xi32>
    %31 = vector.broadcast %30 : vector<1x1xi32> to vector<1x128xi32>
    %32 = arith.cmpi eq, %2, %31 : vector<1x128xi32>
    %33 = arith.ori %29, %32 : vector<1x128xi1>
    %cst = arith.constant 0.000000e+00 : f32
    %34 = vector.broadcast %cst : f32 to vector<1x128xf32>
    %35 = arith.select %33, %0, %34 : vector<1x128xi1>, vector<1x128xf32>
    %cst_3 = arith.constant dense<0.000000e+00> : vector<128xf32>
    %36 = vector.multi_reduction <add>, %35, %cst_3 [0] : vector<1x128xf32> to vector<128xf32>
    %37 = vector.shape_cast %36 : vector<128xf32> to vector<1x128xf32>
    %cst_4 = arith.constant dense<0.000000e+00> : vector<1xf32>
    %38 = vector.multi_reduction <add>, %37, %cst_4 [1] : vector<1x128xf32> to vector<1xf32>
    %39 = vector.shape_cast %38 : vector<1xf32> to vector<1x1xf32>
    %cst_5 = arith.constant -1.250000e-01 : f32
    %40 = vector.broadcast %cst_5 : f32 to vector<1x1xf32>
    %41 = arith.mulf %39, %40 : vector<1x1xf32>
    %c0_6 = arith.constant 0 : index
    %c0_7 = arith.constant 0 : index
    %42 = vector.load %arg3[%c0_6, %c0_7] : memref<1x1xf32, #tpu.memory_space<vmem>>, vector<1x1xf32>
    tpu.vector_store %arg3[%c0_6, %c0_7], %41 {strides = array<i32>} : memref<1x1xf32, #tpu.memory_space<vmem>>, vector<1x1xf32>,
    return
  }
  func.func @transform_0(%arg0: i32) -> (i32, i32) {
    %c0_i32 = arith.constant 0 : i32
    %c0_i32_0 = arith.constant 0 : i32
    %c0_i32_1 = arith.constant 0 : i32
    return %c0_i32, %c0_i32_0 : i32, i32
  }
  func.func @transform_1(%arg0: i32) -> (i32, i32) {
    %c0_i32 = arith.constant 0 : i32
    %c0_i32_0 = arith.constant 0 : i32
    %c0_i32_1 = arith.constant 0 : i32
    return %c0_i32, %c0_i32_0 : i32, i32
  }
  func.func @transform_2(%arg0: i32) -> (i32, i32) {
    %c0_i32 = arith.constant 0 : i32
    %c0_i32_0 = arith.constant 0 : i32
    %c0_i32_1 = arith.constant 0 : i32
    return %c0_i32, %c0_i32_0 : i32, i32
  }
}

</mosaic_0001>

<bundles_post_ra>
// kernel: tpu_custom_call.1
= control target key start
LH: loop header
LB: loop body
LE: loop exit
PB: predicated region body
PF: predicated region fallthrough
CT: control target
= control target key end

     0   :  { %7 = vsyncpa [#allocation3], 0  ;;  %s242_s0 = inlined_call_operand.hbm [shape: f32[1,128], index: 0, kind: input, shape index: {}]   ;;  %s243_s1 = inlined_call_operand.vmem [shape: s32[1,8], index: 1, kind: input, shape index: {}]   ;;  %s244_s2 = inlined_call_operand.hbm [shape: f32[1,1], index: 2, kind: output, shape index: {}]  }
   0x1   :  { %8 = vsyncpa [#allocation4], 0  ;;  %s190_s9 = smov [#allocation2]   ;;  %s142_s13 = scalar_lea.hbm %s242_s0, 16 }
   0x2   :  { %s15_s10 = sshll.u32 %s190_s9, 4  ;;  %p143_p0 = scmp.ne.s32.totalorder %s242_s0, %s142_s13  ;;  %s16_s10 = int_to_ptr.vmem [resolvable:$true] %s15_s10 }
   0x3   :  { %p146_p1 = scmp.lt.u32.totalorder %s142_s13, %s242_s0 }
   0x5   :  { %p148_p2 = pnand %p146_p1, %p143_p0 }
   0x7   :  { %151 = shalt.err (!%p148_p2)
}
   0x8   :  { %s152_s18 = scalar_lea.vmem %s16_s10, 16  ;;  %s156_s19 = scalar_lea.vmem %s16_s10, 32 }
   0x9   :  { %p153_p3 = scmp.ne.s32.totalorder %s16_s10, %s152_s18  ;;  %p157_p4 = scmp.lt.s32.totalorder %s16_s10, %s16_s10 }
   0xa   :  { %p158_p5 = scmp.lt.s32.totalorder %s156_s19, %s152_s18 }
   0xc   :  { %p159_p6 = por %p158_p5, %p157_p4 }
   0xe   :  { %p160_p7 = pnand %p159_p6, %p153_p3 }
  0x10   :  { %163 = shalt.err (!%p160_p7)
}
  0x11   :  { %18 = dma.hbm_to_vmem [thread:$0]  %s242_s0, 16, %s16_s10, [#allocation3]  }
  0x12   :  { %186 = dma.done.wait [#allocation3], 16  }
  0x13   :  { %187 = vsyncadd [#allocation3], 4294967280  ;;  %v191_v0 = vmov 2   ;;  %v192_v1 = vmov 0   ;;  %v25_v2 = vld [vmem:[%s243_s1] sm:$0x1]  ;;  %v26_v9 = vlaneseq }
  0x14   :  { %135 = vset.pattern.permute.xlu1 %v191_v0  ;;  %133 = vset.pattern.permute.xlu0 %v192_v1  ;;  %v193_v3 = vmov 3   ;;  %v194_v4 = vmov 1   ;;  %v195_v5 = vmov 4   ;;  %v196_v6 = vmov 5   ;;  %v24_v29 = vld [vmem:[#allocation2] sm:$0x1] }
  0x15   :  { %46 = vperm.xlu1 %135, %v25_v2   ;;  %29 = vperm.xlu0 %133, %v25_v2   ;;  %v197_v7 = vmov 6   ;;  %v198_v8 = vmov 7   ;;  %v32_v10 = vshrl.u32 %v26_v9, 7  ;;  %v27_v18 = vand.u32 127, %v26_v9  ;;  %s199_s0 = smov [#allocation5]  }
  0x16   :  { %vm101_vm14 = vcmask 1040384   ;;  %s114_s1 = sshll.u32 %s199_s0, 4  ;;  %s115_s1 = int_to_ptr.vmem [resolvable:$true] %s114_s1 }
  0x17   :  { %v33_v13 = vsub.s32 0, %v32_v10  ;;  %s164_s24 = scalar_lea.vmem %s115_s1, 16  ;;  %s168_s25 = scalar_lea.vmem %s115_s1, 32 }
  0x18   :  { %p165_p8 = scmp.ne.s32.totalorder %s115_s1, %s164_s24  ;;  %p169_p9 = scmp.lt.s32.totalorder %s115_s1, %s115_s1 }
  0x19   :  { %136 = vset.pattern.permute.xlu1 %v193_v3  ;;  %134 = vset.pattern.permute.xlu0 %v194_v4  ;;  %p170_p10 = scmp.lt.s32.totalorder %s168_s25, %s164_s24 }
  0x1a   :  { %55 = vperm.xlu1 %136, %v25_v2   ;;  %37 = vperm.xlu0 %134, %v25_v2  }
  0x1b   :  { %p171_p11 = por %p170_p10, %p169_p9 }
  0x1d   :  { %p172_p12 = pnand %p171_p11, %p165_p8 }
  0x1e   :  { %137 = vset.pattern.permute.xlu1 %v195_v5  ;;  %138 = vset.pattern.permute.xlu0 %v196_v6 }
  0x1f   :  { %64 = vperm.xlu1 %137, %v25_v2   ;;  %73 = vperm.xlu0 %138, %v25_v2  }
  0x23   :  { %139 = vset.pattern.permute.xlu1 %v197_v7  ;;  %141 = vset.pattern.permute.xlu0 %v198_v8 }
  0x24   :  { %82 = vperm.xlu1 %139, %v25_v2  }
  0x28   :  { %140 = vset.pattern.permute.xlu1 %v198_v8 }
  0x29   :  { %91 = vperm.xlu1 %140, %v25_v2  }
  0x94   :  { %v47_v11 = vpop.permute.xlu1 %46  ;;  %v30_v12 = vpop.permute.xlu0 %29 }
  0x95   :  { %v34_v14 = vrot.slane %v30_v12, %v33_v13  ;;  %v51_v19 = vrot.slane %v47_v11, %v33_v13 }
  0x97   :  { %vm35_vm0 = vcmp.eq.s32.totalorder %v27_v18, %v34_v14  ;;  %vm52_vm3 = vcmp.eq.s32.totalorder %v27_v18, %v51_v19 }
  0x99   :  { %v56_v15 = vpop.permute.xlu1 %55  ;;  %v38_v16 = vpop.permute.xlu0 %37 }
  0x9a   :  { %v42_v17 = vrot.slane %v38_v16, %v33_v13  ;;  %v60_v23 = vrot.slane %v56_v15, %v33_v13 }
  0x9c   :  { %vm43_vm1 = vcmp.eq.s32.totalorder %v27_v18, %v42_v17  ;;  %vm61_vm6 = vcmp.eq.s32.totalorder %v27_v18, %v60_v23 }
  0x9d   :  { %vm44_vm2 = vmor %vm35_vm0, %vm43_vm1  ;;  %vm106_vm0 = vcmask 0  }
  0x9e   :  { %v65_v20 = vpop.permute.xlu1 %64  ;;  %v74_v22 = vpop.permute.xlu0 %73  ;;  %vm53_vm4 = vmor %vm44_vm2, %vm52_vm3 }
  0x9f   :  { %v69_v21 = vrot.slane %v65_v20, %v33_v13  ;;  %v78_v24 = vrot.slane %v74_v22, %v33_v13  ;;  %vm62_vm7 = vmor %vm53_vm4, %vm61_vm6 }
  0xa1   :  { %vm70_vm5 = vcmp.eq.s32.totalorder %v27_v18, %v69_v21  ;;  %vm79_vm9 = vcmp.eq.s32.totalorder %v27_v18, %v78_v24 }
  0xa2   :  { %vm71_vm8 = vmor %vm62_vm7, %vm70_vm5 }
  0xa3   :  { %v83_v25 = vpop.permute.xlu1 %82  ;;  %vm80_vm11 = vmor %vm71_vm8, %vm79_vm9 }
  0xa4   :  { %v87_v26 = vrot.slane %v83_v25, %v33_v13 }
  0xa6   :  { %vm88_vm10 = vcmp.eq.s32.totalorder %v27_v18, %v87_v26 }
  0xa7   :  { %vm89_vm13 = vmor %vm80_vm11, %vm88_vm10 }
  0xa8   :  { %v92_v27 = vpop.permute.xlu1 %91 }
  0xa9   :  { %v96_v28 = vrot.slane %v92_v27, %v33_v13 }
  0xab   :  { %vm97_vm12 = vcmp.eq.s32.totalorder %v27_v18, %v96_v28 }
  0xac   :  { %vm98_vm15 = vmor %vm89_vm13, %vm97_vm12 }
  0xad   :  { %v99_v30 = vsel %vm98_vm15, %v24_v29, 0.0 }
  0xae   :  { %v102_v31 = vsel %vm101_vm14, %v99_v30, 0.0 }
  0xaf   :  { %103 = vadd.xlane.f32.xlu0 %v102_v31 }
 0x13c   :  { %v104_v32 = vpop.xlane.xlu0 %103 }
 0x13d   :  { %v105_v33 = vmul.f32 -0.125, %v104_v32 }
 0x13f   :  { %107 = vst.msk [vmem:[#allocation5] sm:$0x1] %vm106_vm0, %v105_v33 }
 0x140   :  { %175 = shalt.err (!%p172_p12)
}
 0x141   :  { %s176_s28 = scalar_lea.hbm %s244_s2, 16 }
 0x142   :  { %p177_p13 = scmp.ne.s32.totalorder %s244_s2, %s176_s28  ;;  %p180_p0 = scmp.lt.u32.totalorder %s176_s28, %s244_s2 }
 0x144   :  { %p182_p1 = pnand %p180_p0, %p177_p13 }
 0x146   :  { %185 = shalt.err (!%p182_p1)
}
 0x147   :  { %117 = dma.vmem_to_hbm [thread:$0]  %s115_s1, 16, %s244_s2, [#allocation4]  }
 0x148   :  { %188 = dma.done.wait [#allocation4], 16  }
 0x149   :  { %189 = vsyncadd [#allocation4], 4294967280 }
 0x14a   :  { %121 = vsyncpa [#allocation3], 1 }
 0x14b   :  { %122 = vsyncpa [#allocation4], 1 }

</bundles_post_ra>
